<compile_context>
chip_gen: v5e
topology: v5e:2x2
jax: 0.10.0
libtpu: 0.0.40
codegen_flags: <defaults>
</compile_context>

<pallas_src>
import math

import jax
import jax.numpy as jnp
from jax.experimental import pallas as pl
from jax.experimental.pallas import tpu as pltpu


def _round_up(x, m):
    return ((x + m - 1) // m) * m


# ----------------------------------------------------------------------------
# Kernel 1: batched neighbour transform  H[r] = X[r] @ W[r] + b[r]
# ----------------------------------------------------------------------------
def _h_kernel(x_ref, w_ref, b_ref, h_ref):
    h = jnp.dot(x_ref[...], w_ref[...], preferred_element_type=jnp.float32)
    h_ref[...] = (h + b_ref[...]).astype(h_ref.dtype)


def neighbor_transform(x_stack, w_stack, b_stack, *, tn):
    """x_stack [R, N_pad, F_in_pad] bf16, w_stack [R, F_in_pad, F_pad] bf16,
    b_stack [R, 1, F_pad] f32 -> H [R, N_pad, F_pad] bf16."""
    r, n_pad, f_in = x_stack.shape
    f_out = w_stack.shape[-1]
    return pl.pallas_call(
        _h_kernel,
        out_shape=jax.ShapeDtypeStruct((r, n_pad, f_out), jnp.bfloat16),
        grid=(r, n_pad // tn),
        in_specs=[
            pl.BlockSpec((None, tn, f_in), lambda rr, nn: (rr, nn, 0)),
            pl.BlockSpec((None, f_in, f_out), lambda rr, nn: (rr, 0, 0)),
            pl.BlockSpec((None, 1, f_out), lambda rr, nn: (rr, 0, 0)),
        ],
        out_specs=pl.BlockSpec((None, tn, f_out), lambda rr, nn: (rr, nn, 0)),
        compiler_params=pltpu.CompilerParams(
            dimension_semantics=("parallel", "parallel"),
            vmem_limit_bytes=64 * 1024 * 1024),
    )(x_stack, w_stack, b_stack)


# ----------------------------------------------------------------------------
# Kernel 2: per-destination-type fused aggregation + (mean-folded) norm + ReLU
# ----------------------------------------------------------------------------
def _dty_accum_kernel(rel_ids_ref, a_ref, n_ref, h_ref, o_ref, acc_ref):
    del rel_ids_ref  # consumed only by the index_maps
    r = pl.program_id(1)
    k = pl.program_id(2)

    @pl.when((r == 0) & (k == 0))
    def _():
        acc_ref[...] = jnp.zeros_like(acc_ref)

    # (A tile) @ (H tile) on the MXU (bf16 in, f32 accumulate); per-dst-node norm
    # (already containing the 1/num_relations mean factor) on the VPU.
    agg = jnp.dot(a_ref[...], h_ref[...], preferred_element_type=jnp.float32)
    acc_ref[...] += n_ref[...] * agg

    @pl.when((r == pl.num_programs(1) - 1) & (k == pl.num_programs(2) - 1))
    def _():
        # finalize once: ReLU (Dropout is identity in eval mode).
        o_ref[...] = jnp.maximum(acc_ref[...], 0.0).astype(o_ref.dtype)


def dty_fused_conv(rel_ids, a_stack, norm_stack, h_all, *, tm, tk):
    """rel_ids [R_dty] int32 (indices into h_all's leading axis),
    a_stack [R_dty, N_dst_pad, N_src_pad] bf16, norm_stack [R_dty, N_dst_pad, 1] f32,
    h_all [R_total, N_src_pad, F_pad] bf16 -> [N_dst_pad, F_pad] f32."""
    r, n_dst_pad, n_src_pad = a_stack.shape
    f_out = h_all.shape[-1]
    grid = (n_dst_pad // tm, r, n_src_pad // tk)
    return pl.pallas_call(
        _dty_accum_kernel,
        out_shape=jax.ShapeDtypeStruct((n_dst_pad, f_out), jnp.float32),
        grid_spec=pltpu.PrefetchScalarGridSpec(
            num_scalar_prefetch=1,
            grid=grid,
            in_specs=[
                pl.BlockSpec((None, tm, tk), lambda i, rr, kk, ids: (rr, i, kk)),
                pl.BlockSpec((None, tm, 1), lambda i, rr, kk, ids: (rr, i, 0)),
                # select the relation's H slab via the scalar-prefetched id table
                pl.BlockSpec((None, tk, f_out),
                             lambda i, rr, kk, ids: (ids[rr], kk, 0)),
            ],
            out_specs=pl.BlockSpec((tm, f_out), lambda i, rr, kk, ids: (i, 0)),
            scratch_shapes=[pltpu.VMEM((tm, f_out), jnp.float32)]),
        compiler_params=pltpu.CompilerParams(
            dimension_semantics=("parallel", "arbitrary", "arbitrary"),
            vmem_limit_bytes=64 * 1024 * 1024),
    )(rel_ids, a_stack, norm_stack, h_all)


# ----------------------------------------------------------------------------
# RGCN forward (padding / stacking glue around the two kernels)
# ----------------------------------------------------------------------------
def rgcn_forward(hgraph, xs, norms, params, *, f_out):
    relations = list(hgraph.keys())
    n_of = {t: xs[t].shape[0] for t in xs}

    # global padded source-node / feature extents (lane-dense tiles)
    n_max = max(n_of.values())
    n_src_pad = _round_up(n_max, 128)
    tk = min(n_src_pad, 512)
    n_src_pad = _round_up(n_src_pad, tk)

    f_in_max = max(x.shape[1] for x in xs.values())
    f_in_pad = _round_up(f_in_max, 128)
    f_out_pad = _round_up(f_out, 128)

    # ---- stack padded per-relation operands for the neighbour transform ----
    x_list, w_list, b_list = [], [], []
    for (sty, ety, dty) in relations:
        x = xs[sty]
        x_p = jnp.zeros((n_src_pad, f_in_pad), jnp.bfloat16)
        x_p = x_p.at[: x.shape[0], : x.shape[1]].set(x.astype(jnp.bfloat16))
        w, b = params[ety]
        w_p = jnp.zeros((f_in_pad, f_out_pad), jnp.bfloat16)
        w_p = w_p.at[: w.shape[0], : w.shape[1]].set(w.astype(jnp.bfloat16))
        b_p = jnp.zeros((1, f_out_pad), jnp.float32).at[:, : b.shape[1]].set(b)
        x_list.append(x_p)
        w_list.append(w_p)
        b_list.append(b_p)
    x_stack = jnp.stack(x_list)
    w_stack = jnp.stack(w_list)
    b_stack = jnp.stack(b_list)

    # one launch: H[r] = X[r] @ W[r] + b[r] for all relations
    h_all = neighbor_transform(x_stack, w_stack, b_stack, tn=tk)

    # ---- group relations by destination type; one fused launch per dty ----
    by_dty = {}
    for ri, (sty, ety, dty) in enumerate(relations):
        by_dty.setdefault(dty, []).append(ri)

    outputs = {}
    for dty, rel_ids in by_dty.items():
        n_dst = n_of[dty]
        n_dst_pad = _round_up(n_dst, 8)
        tm = min(n_dst_pad, 256)
        n_dst_pad = _round_up(n_dst_pad, tm)
        inv_r = 1.0 / len(rel_ids)  # HeteroGraphConv mean folded into the norm

        a_list, nrm_list = [], []
        for ri in rel_ids:
            rel = relations[ri]
            adj = hgraph[rel]
            a_p = jnp.zeros((n_dst_pad, n_src_pad), jnp.bfloat16)
            a_p = a_p.at[: adj.shape[0], : adj.shape[1]].set(adj.astype(jnp.bfloat16))
            if norms is not None:
                nrm = norms[str(rel)].reshape(n_dst, 1).astype(jnp.float32)
            else:
                nrm = jnp.ones((n_dst, 1), jnp.float32)
            nrm_p = jnp.zeros((n_dst_pad, 1), jnp.float32).at[:n_dst, :].set(nrm * inv_r)
            a_list.append(a_p)
            nrm_list.append(nrm_p)

        a_stack = jnp.stack(a_list)
        nrm_stack = jnp.stack(nrm_list)
        rel_ids_arr = jnp.asarray(rel_ids, dtype=jnp.int32)

        out_pad = dty_fused_conv(rel_ids_arr, a_stack, nrm_stack, h_all, tm=tm, tk=tk)
        outputs[dty] = out_pad[:n_dst, :f_out]
    return outputs


# Pure-JAX f32 reference implementing the PyTorch module semantics.
def reference_forward(hgraph, xs, norms, params):
    counts, sums = {}, {}
    for (sty, ety, dty), adj in hgraph.items():
        w, b = params[ety]
        h = xs[sty] @ w + b                                   # GCNLayer.fc
        agg = adj @ h                                         # copy_u + aggregate_sum
        if norms is not None:
            nrm = norms[str((sty, ety, dty))].reshape(adj.shape[0], 1)
        else:
            nrm = jnp.ones((adj.shape[0], 1), jnp.float32)
        res = nrm * agg                                       # torch.multiply(norm, h)
        counts[dty] = counts.get(dty, 0) + 1
        sums[dty] = sums.get(dty, 0.0) + res
    # HeteroGraphConv mean over relations, then eval-mode Dropout (identity) + ReLU.
    return {d: jnp.maximum(s / counts[d], 0.0) for d, s in sums.items()}


def _linear_init(key, fan_in, fan_out):
    bound = 1.0 / math.sqrt(fan_in)
    kw, kb = jax.random.split(key)
    w = jax.random.uniform(kw, (fan_in, fan_out), jnp.float32, -bound, bound)
    b = jax.random.uniform(kb, (1, fan_out), jnp.float32, -bound, bound)
    return w, b


if __name__ == "__main__":
    key = jax.random.PRNGKey(0)
    keys = jax.random.split(key, 16)

    n_user, n_item = 16, 8
    f_in, f_out = 32, 32

    # node features
    xs = {
        "user": jax.random.normal(keys[0], (n_user, f_in), jnp.float32),
        "item": jax.random.normal(keys[1], (n_item, f_in), jnp.float32),
    }

    # hetero graph: dense 0/1 adjacencies [N_dst, N_src]
    def rand_adj(k, shape):
        return (jax.random.uniform(k, shape, jnp.float32) > 0.5).astype(jnp.float32)

    hgraph = {
        ("user", "buys", "item"): rand_adj(keys[2], (n_item, n_user)),
        ("item", "bought_by", "user"): rand_adj(keys[3], (n_user, n_item)),
        ("user", "follows", "user"): rand_adj(keys[4], (n_user, n_user)),
    }

    # per-relation destination-node norms (e.g. 1/deg), shape [N_dst, 1]
    norms = {
        str(rel): jax.random.uniform(keys[5 + i], (adj.shape[0], 1), jnp.float32, 0.1, 1.0)
        for i, (rel, adj) in enumerate(hgraph.items())
    }

    # per-edge-type GCNLayer parameters (W, b) — same in/out features for all etypes
    params = {}
    for i, (sty, ety, dty) in enumerate(hgraph.keys()):
        params[ety] = _linear_init(keys[10 + i], f_in, f_out)

    out = rgcn_forward(hgraph, xs, norms, params, f_out=f_out)
    out = jax.tree_util.tree_map(jax.block_until_ready, out)

    ref = reference_forward(hgraph, xs, norms, params)
    for dty in ref:
        assert out[dty].shape == ref[dty].shape, (dty, out[dty].shape, ref[dty].shape)
        # bf16 operands with f32 accumulation -> loosened tolerance vs f32 reference
        assert jnp.allclose(out[dty], ref[dty], atol=5e-2, rtol=5e-2), dty

    print("KERNEL_OK")
</pallas_src>

<mosaic_0001>
module attributes {stable_mosaic.version = 11 : i64} {
  func.func @_h_kernel(%arg0: i32, %arg1: i32, %arg2: memref<1x128x128xbf16, #tpu.memory_space<vmem>>, %arg3: memref<1x128x128xbf16, #tpu.memory_space<vmem>>, %arg4: memref<1x1x128xf32, #tpu.memory_space<vmem>>, %arg5: memref<1x128x128xbf16, #tpu.memory_space<vmem>>) attributes {dimension_semantics = [#tpu.dimension_semantics<parallel>, #tpu.dimension_semantics<parallel>], iteration_bounds = array<i64: 3, 1>, scalar_prefetch = 0 : i64, scratch_operands = 0 : i64, tpu.core_type = #tpu.core_type<tc>, window_params = [{transform_indices = @transform_0, window_bounds = array<i64: 1, 128, 128>}, {transform_indices = @transform_1, window_bounds = array<i64: 1, 128, 128>}, {transform_indices = @transform_2, window_bounds = array<i64: 1, 1, 128>}, {transform_indices = @transform_3, window_bounds = array<i64: 1, 128, 128>}]} {
    %c0 = arith.constant 0 : index
    %c0_0 = arith.constant 0 : index
    %c0_1 = arith.constant 0 : index
    %0 = vector.load %arg2[%c0, %c0_0, %c0_1] : memref<1x128x128xbf16, #tpu.memory_space<vmem>>, vector<1x128x128xbf16>
    %1 = vector.shape_cast %0 : vector<1x128x128xbf16> to vector<128x128xbf16>
    %c0_2 = arith.constant 0 : index
    %c0_3 = arith.constant 0 : index
    %c0_4 = arith.constant 0 : index
    %2 = vector.load %arg3[%c0_2, %c0_3, %c0_4] : memref<1x128x128xbf16, #tpu.memory_space<vmem>>, vector<1x128x128xbf16>
    %3 = vector.shape_cast %2 : vector<1x128x128xbf16> to vector<128x128xbf16>
    %cst = arith.constant dense<0.000000e+00> : vector<128x128xf32>
    %4 = tpu.matmul %1, %3, %cst {dimension_numbers = #tpu.dot_dimension_numbers<[1], [0], [0], [1], [0, 0, 1, 1], [], []>} : vector<128x128xbf16>, vector<128x128xbf16>, vector<128x128xf32> -> vector<128x128xf32>
    %c0_5 = arith.constant 0 : index
    %c0_6 = arith.constant 0 : index
    %c0_7 = arith.constant 0 : index
    %5 = vector.load %arg4[%c0_5, %c0_6, %c0_7] : memref<1x1x128xf32, #tpu.memory_space<vmem>>, vector<1x1x128xf32>
    %6 = vector.shape_cast %5 : vector<1x1x128xf32> to vector<1x128xf32>
    %7 = vector.broadcast %6 : vector<1x128xf32> to vector<128x128xf32>
    %8 = arith.addf %4, %7 : vector<128x128xf32>
    %9 = arith.truncf %8 : vector<128x128xf32> to vector<128x128xbf16>
    %c0_8 = arith.constant 0 : index
    %c0_9 = arith.constant 0 : index
    %c0_10 = arith.constant 0 : index
    %10 = vector.load %arg5[%c0_8, %c0_9, %c0_10] : memref<1x128x128xbf16, #tpu.memory_space<vmem>>, vector<1x128x128xbf16>
    %11 = vector.shape_cast %10 : vector<1x128x128xbf16> to vector<128x128xbf16>
    %12 = vector.shape_cast %9 : vector<128x128xbf16> to vector<1x128x128xbf16>
    tpu.vector_store %arg5[%c0_8, %c0_9, %c0_10], %12 {strides = array<i32>} : memref<1x128x128xbf16, #tpu.memory_space<vmem>>, vector<1x128x128xbf16>,
    return
  }
  func.func @transform_0(%arg0: i32, %arg1: i32) -> (i32, i32, i32) {
    %c0_i32 = arith.constant 0 : i32
    %c0_i32_0 = arith.constant 0 : i32
    return %arg0, %arg1, %c0_i32 : i32, i32, i32
  }
  func.func @transform_1(%arg0: i32, %arg1: i32) -> (i32, i32, i32) {
    %c0_i32 = arith.constant 0 : i32
    %c0_i32_0 = arith.constant 0 : i32
    %c0_i32_1 = arith.constant 0 : i32
    return %arg0, %c0_i32, %c0_i32_0 : i32, i32, i32
  }
  func.func @transform_2(%arg0: i32, %arg1: i32) -> (i32, i32, i32) {
    %c0_i32 = arith.constant 0 : i32
    %c0_i32_0 = arith.constant 0 : i32
    %c0_i32_1 = arith.constant 0 : i32
    return %arg0, %c0_i32, %c0_i32_0 : i32, i32, i32
  }
  func.func @transform_3(%arg0: i32, %arg1: i32) -> (i32, i32, i32) {
    %c0_i32 = arith.constant 0 : i32
    %c0_i32_0 = arith.constant 0 : i32
    return %arg0, %arg1, %c0_i32 : i32, i32, i32
  }
}

</mosaic_0001>

<bundles_post_ra>
// kernel: tpu_custom_call.1
= control target key start
LH: loop header
LB: loop body
LE: loop exit
PB: predicated region body
PF: predicated region fallthrough
CT: control target
= control target key end

     0   :  { %s1289_s0 = inlined_call_operand.hbm [shape: bf16[3,128,128], index: 0, kind: input, shape index: {}]   ;;  %s1290_s1 = inlined_call_operand.hbm [shape: bf16[3,128,128], index: 1, kind: input, shape index: {}]   ;;  %s1291_s2 = inlined_call_operand.hbm [shape: f32[3,1,128], index: 2, kind: input, shape index: {}]   ;;  %s1292_s3 = inlined_call_operand.hbm [shape: bf16[3,128,128], index: 3, kind: output, shape index: {}]  }
   0x1   :  { %1297 = sst [smem:[#allocation17_spill]] %s1290_s1 }
   0x2   :  { %8 = vsyncpa [#allocation3], 0 }
   0x3   :  { %10 = vsyncpa [#allocation3 + $0x1], 0 }
   0x4   :  { %11 = vsyncpa [#allocation6], 0 }
   0x5   :  { %13 = vsyncpa [#allocation6 + $0x1], 0 }
   0x6   :  { %14 = vsyncpa [#allocation4], 0 }
   0x7   :  { %16 = vsyncpa [#allocation4 + $0x1], 0  ;;  %s1094_s12 = smov 0   ;;  %s1096_s13 = smov 0  }
   0x8   :  { %s1098_s14 = smov 0   ;;  %s1100_s15 = smov 0  }
   0x9   :  { %s1102_s16 = smov 0   ;;  %s1104_s17 = smov 0  }
   0xa LB: > { %1298 = sst [smem:[#allocation12_spill]] %s1048_s12  ;;  %s1125_s18 = sadd.s32 4294967295, %s1068_s17   ;;  %s1068_s17 = sphi %s1104_s17, %s22_s17   ;;  %s1064_s16 = sphi %s1102_s16, %s1319_s16   ;;  %s1060_s15 = sphi %s1100_s15, %s1318_s15   ;;  %s1056_s14 = sphi %s1098_s14, %s1317_s14   ;;  %s1052_s13 = sphi %s1096_s13, %s1316_s13   ;;  %s1048_s12 = sphi %s1094_s12, %s1315_s12  }
   0xb   : > { %1299 = sst [smem:[#allocation13_spill]] %s1056_s14  ;;  %s643_s19 = sadd.s32 4294967294, %s1068_s17  }
   0xc   : > { %s34_s20 = sadd.s32 1, %s1064_s16  ;;  %s43_s21 = sadd.s32 1, %s1056_s14 }
   0xd   : > { %p36_p0 = scmp.ge.s32.totalorder %s34_s20, 3  ;;  %p50_p1 = scmp.ne.s32.totalorder %s1056_s14, %s1052_s13 }
   0xe   : > { %p51_p2 = scmp.eq.s32.totalorder %s1068_s17, 0  ;;  %p56_p3 = scmp.ne.s32.totalorder %s1052_s13, %s1048_s12 }
   0xf   : > { %s1321_s20 = smov (%p36_p0, %s34_s20), 0  ;;  %p57_p5 = scmp.eq.s32.totalorder %s1125_s18, 0 }
  0x10   : > { %1300 = sst [smem:[#allocation14_spill]] %s1321_s20  ;;  %p1137_p4 = por %p51_p2, %p50_p1 }
  0x11   : > { %s38_s23 = ssub.s32 %s1064_s16, %s1321_s20  ;;  %p134_p6 = scmp.eq.s32.totalorder %s1125_s18, 2 }
  0x12   : > { %p41_p7 = scmp.eq.s32.totalorder %s38_s23, 0  ;;  %p1145_p8 = por %p57_p5, %p56_p3 }
  0x13   : > { %p1149_p9 = por %p134_p6, %p50_p1  ;;  %p140_p10 = scmp.eq.s32.totalorder %s643_s19, 2 }
  0x14   : > { %s1154_s26 = scalar_select %p41_p7, %s1056_s14, %s43_s21  }
  0x15   : > { %p1156_p11 = por %p140_p10, %p56_p3  ;;  %p837_p12 = scmp.lt.s32.totalorder %s1068_s17, 3 }
  0x16   : > { %1304 = sst [smem:[#allocation15_spill]] %s1154_s26  ;;  %s1162_s28 = sand.u32 1, %s1056_s14  }
  0x17   : > { %s1305_s27 = scalar_select %p1156_p11, 1, 0 }
  0x18   : > { %s646_s29 = sshll.u32 %s1162_s28, 6  ;;  %s725_s30 = sshll.u32 %s1064_s16, 6 }
  0x19   : > { %1306 = sst [smem:[#allocation16_spill]] %s1305_s27  ;;  %p1168_p13 = pnand %p837_p12, %p1137_p4 }
  0x1a   : > { %s184_s5 = sand.u32 1, %s1068_s17   ;;  %s1308_s1 = sld [smem:[#allocation17_spill]] }
  0x1b   : > { %s188_s10 = scalar_lea.vmem [#allocation5], %s646_s29  ;;  %s185_s19 = scalar_lea.sflag [#allocation6], %s184_s5 }
  0x1c   : > { %s196_s11 = sshll.u32 %s188_s10, 4  ;;  %s1070_s21 = smov 64   ;;  %s197_s11 = int_to_ptr.vmem [resolvable:$true] %s196_s11 }
  0x1d   : > { %s1071_s22 = smov 4   ;;  %p652_p0 = scmp.ge.s32.totalorder %s1068_s17, 1 }
  0x1e   : > { %p221_p1 = scmp.lt.s32.totalorder %s1068_s17, 4  ;;  %s161_s5 = scalar_lea.sflag [#allocation3], %s1162_s28 }
  0x1f   : > { %s212_s26 = scalar_lea.hbm %s1291_s2, %s1064_s16  ;;  %s209_s27 = scalar_lea.vmem [#allocation7], %s1162_s28 }
  0x20   : > { %s193_s8 = scalar_lea.hbm %s1308_s1, %s725_s30  ;;  %p1180_p2 = pnand %p652_p0, %p221_p1 }
  0x21   : > { %s194_s9 = sshll.u32 %s193_s8, 4  ;;  %s171_s8 = scalar_lea.hbm %s1289_s0, %s725_s30  ;;  %s195_s9 = int_to_ptr.hbm [resolvable:$true] %s194_s9 }
  0x22   : > { %829 = dma.hbm_to_vmem [thread:$0]  (!%p1168_p13), %s195_s9, 1024, %s197_s11, %s185_s19, %s1070_s21, %s1070_s21, %s1071_s22  }
  0x23   : > { %s172_s10 = sshll.u32 %s171_s8, 4  ;;  %s164_s1 = scalar_lea.vmem [#allocation2], %s646_s29  ;;  %s173_s10 = int_to_ptr.hbm [resolvable:$true] %s172_s10 }
  0x24   : > { %s174_s20 = sshll.u32 %s164_s1, 4  ;;  %s214_s14 = sshll.u32 %s212_s26, 4  ;;  %s175_s20 = int_to_ptr.vmem [resolvable:$true] %s174_s20  ;;  %s215_s14 = int_to_ptr.hbm [resolvable:$true] %s214_s14 }
  0x25   : > { %826 = dma.hbm_to_vmem [thread:$0]  (!%p1168_p13), %s173_s10, 1024, %s175_s20, %s161_s5, %s1070_s21, %s1070_s21, %s1071_s22  }
  0x26   : > { %s216_s12 = sshll.u32 %s209_s27, 4  ;;  %225 = sbr.rel (%p1180_p2) target bundleno = 245 (0xf5), region = 32  ;;  %s217_s12 = int_to_ptr.vmem [resolvable:$true] %s216_s12 }
  0x27   : > { %832 = dma.hbm_to_vmem [thread:$0]  (!%p1168_p13), %s215_s14, 16, %s217_s12, %s185_s19  }
  0x28   : > { %s1200_s1 = sand.u32 (!%p1180_p2), 1, %s1052_s13  }
  0x29   : > { %s1203_s20 = sshll.u32 (!%p1180_p2), %s1200_s1, 6  ;;  %s228_s29 = scalar_lea.sflag (!%p1180_p2), [#allocation3], %s1200_s1 }
  0x2a   : > { %s1207_s26 = scalar_lea.vmem (!%p1180_p2), [#allocation2], %s1203_s20 }
  0x2b   : > { %1035 = dma.done.wait (%p1145_p8), %s228_s29, 1024  }
  0x2c   : > { %1037 = vsyncadd (%p1145_p8), %s228_s29, 4294966272  ;;  %s237_s12 = sand.u32 1, %s1125_s18   ;;  %s1215_s27 = scalar_lea.vmem [#allocation5], %s1203_s20 }
  0x2d   : > { %s238_s14 = scalar_lea.sflag [#allocation6], %s237_s12 }
  0x2e   : > { %1039 = dma.done.wait (%p1145_p8), %s238_s14, 1040  }
  0x2f   : > { %1041 = vsyncadd (%p1145_p8), %s238_s14, 4294966256  ;;  %v742_v0 = vld [vmem:[%s1215_s27 + $0x38] sm:$0xff]  ;;  %v741_v1 = vld [vmem:[%s1215_s27 + $0x30] sm:$0xff]  ;;  %s250_s18 = scalar_lea.vmem [#allocation7], %s1200_s1  ;;  %s1241_s24 = scalar_lea.vmem [#allocation8], %s1203_s20 }
  0x30   : > { %417 = vmatpush.bf16.msra.mxu0 %v742_v0  ;;  %791 = vmatpush.bf16.msra.mxu1 %v742_v0  ;;  %v740_v2 = vld [vmem:[%s1215_s27 + $0x28] sm:$0xff]  ;;  %v739_v3 = vld [vmem:[%s1215_s27 + $0x20] sm:$0xff]  ;;  %v738_v4 = vld [vmem:[%s1215_s27 + $0x18] sm:$0xff]  ;;  %s743_s28 = sshll.u32 %s1060_s15, 6  ;;  %s513_s21 = sshll.u32 %s1241_s24, 4  ;;  %s514_s21 = int_to_ptr.vmem [resolvable:$true] %s513_s21 }
  0x31   : > { %792 = vmatpush.bf16.msra.mxu2 %v742_v0  ;;  %793 = vmatpush.bf16.msra.mxu3 %v742_v0  ;;  %v737_v5 = vld [vmem:[%s1215_s27 + $0x10] sm:$0xff]  ;;  %v736_v6 = vld [vmem:[%s1215_s27 + $0x8] sm:$0xff]  ;;  %v735_v7 = vld [vmem:[%s1215_s27] sm:$0xff]  ;;  %s512_s19 = scalar_lea.hbm %s1292_s3, %s743_s28  ;;  %s499_s15 = scalar_lea.sflag [#allocation4], %s1200_s1 }
  0x32   : > { %v727_v8 = vld [vmem:[%s1207_s26] sm:$0xff]  ;;  %v729_v9 = vld [vmem:[%s1207_s26 + $0x10] sm:$0xff]  ;;  %v728_v12 = vld [vmem:[%s1207_s26 + $0x8] sm:$0xff]  ;;  %s515_s22 = sshll.u32 %s512_s19, 4  ;;  %s1002_s10 = scalar_lea.hbm %s1292_s3, 192  ;;  %s516_s22 = int_to_ptr.hbm [resolvable:$true] %s515_s22 }
  0x33   : > { %v731_v10 = vld [vmem:[%s1207_s26 + $0x20] sm:$0xff]  ;;  %v733_v11 = vld [vmem:[%s1207_s26 + $0x30] sm:$0xff]  ;;  %v730_v13 = vld [vmem:[%s1207_s26 + $0x18] sm:$0xff]  ;;  %s996_s23 = sshra.s32 %s516_s22, 4  ;;  %s997_s23 = int_to_ptr.hbm [resolvable:$true] %s996_s23 }
  0x34   : > { %418 = vmatpush.bf16.msra.mxu0 %v741_v1  ;;  %794 = vmatpush.bf16.msra.mxu1 %v741_v1  ;;  %v732_v14 = vld [vmem:[%s1207_s26 + $0x28] sm:$0xff]  ;;  %v734_v15 = vld [vmem:[%s1207_s26 + $0x38] sm:$0xff]  ;;  %v891_v18 = vld [vmem:[%s250_s18] ss:$0 sm:$0xff]  ;;  %s998_s6 = scalar_lea.hbm %s997_s23, 64  ;;  %p1003_p6 = scmp.lt.s32.totalorder %s997_s23, %s1292_s3 }
  0x35   : > { %795 = vmatpush.bf16.msra.mxu2 %v741_v1  ;;  %796 = vmatpush.bf16.msra.mxu3 %v741_v1  ;;  %p999_p3 = scmp.ne.s32.totalorder %s997_s23, %s998_s6  ;;  %p1004_p7 = scmp.lt.s32.totalorder %s1002_s10, %s998_s6 }
  0x37   : > { %p1000_p4 = pnand %p999_p3, %p1149_p9  ;;  %p1005_p8 = por %p1004_p7, %p1003_p6 }
  0x38   : > { %419 = vmatpush.bf16.msra.mxu0 %v740_v2  ;;  %797 = vmatpush.bf16.msra.mxu1 %v740_v2 }
  0x39   : > { %798 = vmatpush.bf16.msra.mxu2 %v740_v2  ;;  %799 = vmatpush.bf16.msra.mxu3 %v740_v2  ;;  %p1001_p5 = pneg %p1000_p4 }
  0x3b   : > { %p1006_p10 = pnand %p1005_p8, %p1001_p5 }
  0x3c   : > { %420 = vmatpush.bf16.msra.mxu0 %v739_v3  ;;  %800 = vmatpush.bf16.msra.mxu1 %v739_v3 }
  0x3d   : > { %801 = vmatpush.bf16.msra.mxu2 %v739_v3  ;;  %802 = vmatpush.bf16.msra.mxu3 %v739_v3 }
  0x40   : > { %421 = vmatpush.bf16.msra.mxu0 %v738_v4  ;;  %803 = vmatpush.bf16.msra.mxu1 %v738_v4 }
  0x41   : > { %804 = vmatpush.bf16.msra.mxu2 %v738_v4  ;;  %805 = vmatpush.bf16.msra.mxu3 %v738_v4 }
  0x44   : > { %422 = vmatpush.bf16.msra.mxu0 %v737_v5  ;;  %806 = vmatpush.bf16.msra.mxu1 %v737_v5 }
  0x45   : > { %807 = vmatpush.bf16.msra.mxu2 %v737_v5  ;;  %808 = vmatpush.bf16.msra.mxu3 %v737_v5 }
  0x48   : > { %423 = vmatpush.bf16.msra.mxu0 %v736_v6  ;;  %809 = vmatpush.bf16.msra.mxu1 %v736_v6 }
  0x49   : > { %810 = vmatpush.bf16.msra.mxu2 %v736_v6  ;;  %811 = vmatpush.bf16.msra.mxu3 %v736_v6 }
  0x4c   : > { %424 = vmatpush.bf16.msra.mxu0 %v735_v7  ;;  %812 = vmatpush.bf16.msra.mxu1 %v735_v7 }
  0x4d   : > { %813 = vmatpush.bf16.msra.mxu2 %v735_v7  ;;  %814 = vmatpush.bf16.msra.mxu3 %v735_v7 }
  0x4f   : > { %425 = vmatmul.bf16.vlgmr.msra.gmra.mxu0 %v727_v8  ;;  %435 = vmatmul.bf16.vlgmr.msra.gmra.mxu1 %v729_v9 }
  0x50   : > { %445 = vmatmul.bf16.vlgmr.msra.gmra.mxu2 %v731_v10  ;;  %455 = vmatmul.bf16.vlgmr.msra.gmra.mxu3 %v733_v11 }
  0x5f   : > { %430 = vmatmul.bf16.gmra.mxu0 %v728_v12  ;;  %440 = vmatmul.bf16.gmra.mxu1 %v730_v13 }
  0x60   : > { %450 = vmatmul.bf16.gmra.mxu2 %v732_v14  ;;  %460 = vmatmul.bf16.gmra.mxu3 %v734_v15 }
  0xcc   : > { %v426_v16 = vpop.f32.mrf.mxu0  ;;  %v436_v17 = vpop.f32.mrf.mxu1 }
  0xcd   : > { %v427_v23 = vadd.f32 %v891_v18, %v426_v16  ;;  %v437_v24 = vadd.f32 %v891_v18, %v436_v17 }
  0xd3   : > { %v446_v19 = vpop.f32.mrf.mxu2  ;;  %v456_v20 = vpop.f32.mrf.mxu3 }
  0xd4   : > { %v428_v21 = vpop.f32.mrf.mxu0  ;;  %v438_v22 = vpop.f32.mrf.mxu1  ;;  %v447_v31 = vadd.f32 %v891_v18, %v446_v19  ;;  %v457_v32 = vadd.f32 %v891_v18, %v456_v20 }
  0xd5   : > { %v429_v25 = vadd.f32 %v891_v18, %v428_v21  ;;  %v439_v26 = vadd.f32 %v891_v18, %v438_v22 }
  0xd7   : > { %v747_v27 = vpack.c.bf16 %v429_v25, %v427_v23  ;;  %v757_v28 = vpack.c.bf16 %v439_v26, %v437_v24 }
  0xd9   : > { %748 = vst [vmem:[%s1241_s24] sm:$0xff] %v747_v27  }
  0xda   : > { %785 = vst [vmem:[%s1241_s24 + $0x10] sm:$0xff] %v757_v28  }
  0xdb   : > { %v448_v29 = vpop.f32.mrf.mxu2  ;;  %v458_v30 = vpop.f32.mrf.mxu3 }
  0xdc   : > { %v449_v33 = vadd.f32 %v891_v18, %v448_v29  ;;  %v459_v34 = vadd.f32 %v891_v18, %v458_v30  ;;  %v431_v35 = vpop.f32.mrf.mxu0  ;;  %v441_v36 = vpop.f32.mrf.mxu1 }
  0xdd   : > { %v432_v43 = vadd.f32 %v891_v18, %v431_v35  ;;  %v442_v44 = vadd.f32 %v891_v18, %v441_v36 }
  0xde   : > { %v767_v37 = vpack.c.bf16 %v449_v33, %v447_v31  ;;  %v777_v38 = vpack.c.bf16 %v459_v34, %v457_v32 }
  0xe0   : > { %787 = vst [vmem:[%s1241_s24 + $0x20] sm:$0xff] %v767_v37  }
  0xe1   : > { %789 = vst [vmem:[%s1241_s24 + $0x30] sm:$0xff] %v777_v38  }
  0xe3   : > { %v451_v39 = vpop.f32.mrf.mxu2  ;;  %v461_v40 = vpop.f32.mrf.mxu3 }
  0xe4   : > { %v433_v41 = vpop.f32.mrf.mxu0  ;;  %v443_v42 = vpop.f32.mrf.mxu1  ;;  %v452_v51 = vadd.f32 %v891_v18, %v451_v39  ;;  %v462_v52 = vadd.f32 %v891_v18, %v461_v40 }
  0xe5   : > { %v434_v45 = vadd.f32 %v891_v18, %v433_v41  ;;  %v444_v46 = vadd.f32 %v891_v18, %v443_v42 }
  0xe7   : > { %v752_v47 = vpack.c.bf16 %v434_v45, %v432_v43  ;;  %v762_v48 = vpack.c.bf16 %v444_v46, %v442_v44 }
  0xe9   : > { %784 = vst [vmem:[%s1241_s24 + $0x8] sm:$0xff] %v752_v47  }
  0xea   : > { %786 = vst [vmem:[%s1241_s24 + $0x18] sm:$0xff] %v762_v48  }
  0xeb   : > { %v453_v49 = vpop.f32.mrf.mxu2  ;;  %v463_v50 = vpop.f32.mrf.mxu3 }
  0xec   : > { %v454_v53 = vadd.f32 %v891_v18, %v453_v49  ;;  %v464_v54 = vadd.f32 %v891_v18, %v463_v50 }
  0xee   : > { %v772_v55 = vpack.c.bf16 %v454_v53, %v452_v51  ;;  %v782_v56 = vpack.c.bf16 %v464_v54, %v462_v52 }
  0xf0   : > { %788 = vst [vmem:[%s1241_s24 + $0x28] sm:$0xff] %v772_v55  }
  0xf1   : > { %790 = vst [vmem:[%s1241_s24 + $0x38] sm:$0xff] %v782_v56  }
  0xf2   : > { %1009 = shalt.err (!%p1006_p10)
}
  0xf3   : > { %s1072_s11 = smov 64   ;;  %s1073_s1 = smov 4  }
  0xf4   : > { %821 = dma.vmem_to_hbm [thread:$0]  (%p1149_p9), %s514_s21, 1024, %s516_s22, %s499_s15, %s1072_s11, %s1072_s11, %s1073_s1  }
  0xf5 PF: > { %s1310_s20 = sld [smem:[#allocation12_spill]]  ;;  %p838_p12 = scmp.ge.s32.totalorder %s1068_s17, 2 }
  0xf7   : > { %p834_p13 = pnand %p838_p12, %p1156_p11 }
  0xf9   : > { %p835_p0 = pneg %p834_p13 }
  0xfb   : > { %s530_s26 = sand.u32 1, %s1310_s20  }
  0xfc   : > { %s531_s12 = scalar_lea.sflag [#allocation4], %s530_s26 }
  0xfd   : > { %1043 = dma.done.wait (%p835_p0), %s531_s12, 1024  }
  0xfe   : > { %1045 = vsyncadd (%p835_p0), %s531_s12, 4294966272  ;;  %s22_s17 = sadd.s32 1, %s1068_s17   ;;  %s1312_s14 = sld [smem:[#allocation13_spill]] }
  0xff   : > { %p19_p1 = scmp.ge.s32.totalorder %s22_s17, 5   ;;  %s1313_s27 = sld [smem:[#allocation15_spill]] }
 0x100   : > { %s1314_s25 = sld [smem:[#allocation14_spill]]  ;;  %s1315_s12 = smov %s1052_s13 }
 0x101   : > { %s1318_s15 = smov %s1064_s16 }
 0x102   :  { %21 = sbr.rel (!%p19_p1) target bundleno = 10 (0xa), region = 101 }
 0x104   : > { %s1316_s13 = smov %s1312_s14 }
 0x105   : > { %s1317_s14 = smov %s1313_s27 }
 0x106   : > { %s1319_s16 = smov %s1314_s25 }
 0x107   :  { %537 = vsyncpa [#allocation3], 1 }
 0x108   :  { %539 = vsyncpa [#allocation3 + $0x1], 1 }
 0x109   :  { %540 = vsyncpa [#allocation6], 1 }
 0x10a   :  { %542 = vsyncpa [#allocation6 + $0x1], 1 }
 0x10b   :  { %543 = vsyncpa [#allocation4], 1 }
 0x10c   :  { %545 = vsyncpa [#allocation4 + $0x1], 1 }

</bundles_post_ra>
